<compile_context>
chip_gen: v5e
topology: v5e:2x2
jax: 0.10.0
libtpu: 0.0.40
codegen_flags: <defaults>
</compile_context>

<pallas_src>
import numpy as np

import jax
import jax.numpy as jnp
from jax.experimental import pallas as pl
from jax.experimental.pallas import tpu as pltpu

# ----------------------------- problem sizes --------------------------------
NODE_TYPES = ("paper", "author")
EDGE_TYPES = (("paper", "cites", "paper"), ("author", "writes", "paper"))

N_PAPER, N_AUTHOR = 16, 12          # nodes per node type
F_IN, HID, N_CLS = 32, 32, 4        # in-features, hidden, classes
E_PP, E_AP = 40, 30                 # edges per edge type
PAD_CLS = 128                       # lane-dense head width (unmasked vst)
OUTPUT_IDX = 3                      # target 'paper' node for the explanation

SUBLANE = 8                         # sample-axis (sublane) alignment
TB_MAX = 256                        # samples per grid step for large Captum batches


# ------------------------------ fused kernel --------------------------------
def _captum_hetero_kernel(x_p_ref, x_a_ref, em_pp_ref, em_ap_ref,
                          m_pp_ref, m_ap_ref, self_oh_ref,
                          w_cat_ref, b1_ref, w_out_ref, b_out_ref,
                          o_ref):
    """One grid step == TB Captum mask samples (sample index on the M/sublane axis).

    Fuses: masked-adjacency row build (dst == output_idx, via precomputed
    selection matrices), hetero conv (sum aggregation, edge-mask-weighted
    messages), ReLU, merged linear hidden layer, linear head and the
    output_idx row-select into a single kernel invocation.
    """
    f32 = jnp.float32
    x_p = x_p_ref[...]                                   # (TB, N_P, F)
    x_a = x_a_ref[...]                                   # (TB, N_A, F)

    # ---- masked adjacency rows for the selected destination, whole batch ----
    # a[b, j] = sum_e em[b, e] * [dst[e] == idx] * [src[e] == j]  ==  em @ M
    # (duplicate edges sum, matching PyG sum aggregation / np.add.at).
    a_pp = jnp.dot(em_pp_ref[...], m_pp_ref[...],
                   preferred_element_type=f32)           # (TB, N_P)
    a_ap = jnp.dot(em_ap_ref[...], m_ap_ref[...],
                   preferred_element_type=f32)           # (TB, N_A)

    # ---- batched neighbour / self aggregation (VPU broadcast-mul + reduce) ----
    xp_agg = jnp.sum(a_pp[:, :, None] * x_p, axis=1)                 # (TB, F)
    xa_agg = jnp.sum(a_ap[:, :, None] * x_a, axis=1)                 # (TB, F)
    x_self = jnp.sum(self_oh_ref[...][:, :, None] * x_p, axis=1)     # (TB, F)

    # ---- merged hidden matmul (one K = 3*F_IN pass) + ReLU ----
    feat = jnp.concatenate([xp_agg, xa_agg, x_self], axis=-1)        # (TB, 3F)
    h = jnp.dot(feat, w_cat_ref[...], preferred_element_type=f32) + b1_ref[...]
    h = jnp.maximum(h, 0.0)                                          # (TB, HID)

    # ---- lane-dense head, one slab store ----
    o_ref[...] = (jnp.dot(h, w_out_ref[...], preferred_element_type=f32)
                  + b_out_ref[...])                                  # (TB, 128)


@jax.jit
def _fused_forward(x_p, x_a, em_pp, em_ap, ei_pp, ei_ap,
                   w_cat, b1, w_out_pad, b_out_pad, out_idx):
    """Batched Captum forward: whole sample batch in (at most a few) grid steps."""
    B, n_p, f_in = x_p.shape
    n_a = x_a.shape[1]
    e_pp = ei_pp.shape[1]
    e_ap = ei_ap.shape[1]
    k_cat = w_cat.shape[0]
    hid = w_cat.shape[1]
    pad_cls = w_out_pad.shape[1]
    f32 = jnp.float32

    # ---- sample-invariant selection matrices (tiny XLA ops, outside kernel) ----
    idx = out_idx.astype(jnp.int32)
    src_pp, dst_pp = ei_pp[0].astype(jnp.int32), ei_pp[1].astype(jnp.int32)
    src_ap, dst_ap = ei_ap[0].astype(jnp.int32), ei_ap[1].astype(jnp.int32)
    m_pp = ((dst_pp == idx)[:, None]
            * (src_pp[:, None] == jnp.arange(n_p)[None, :])).astype(f32)  # (E_PP, N_P)
    m_ap = ((dst_ap == idx)[:, None]
            * (src_ap[:, None] == jnp.arange(n_a)[None, :])).astype(f32)  # (E_AP, N_A)
    self_oh = (jnp.arange(n_p)[None, :] == idx).astype(f32)               # (1, N_P)

    # ---- sample-batch tiling: one fat step if small, TB_MAX chunks if large ----
    if B <= TB_MAX:
        b_pad = -(-B // SUBLANE) * SUBLANE
        tb = b_pad
    else:
        b_pad = -(-B // TB_MAX) * TB_MAX
        tb = TB_MAX
    grid = (b_pad // tb,)

    pad_b = lambda a: jnp.pad(a, ((0, b_pad - B),) + ((0, 0),) * (a.ndim - 1))
    x_p_p = pad_b(x_p.astype(f32))
    x_a_p = pad_b(x_a.astype(f32))
    em_pp_p = pad_b(em_pp.astype(f32))
    em_ap_p = pad_b(em_ap.astype(f32))

    # Full last-two-dim blocks everywhere; weights / selection matrices resident
    # via constant index maps.  Default double-buffering, no extra depth.
    out = pl.pallas_call(
        _captum_hetero_kernel,
        grid=grid,
        in_specs=[
            pl.BlockSpec((tb, n_p, f_in), lambda g: (g, 0, 0)),   # x_paper  (per chunk)
            pl.BlockSpec((tb, n_a, f_in), lambda g: (g, 0, 0)),   # x_author (per chunk)
            pl.BlockSpec((tb, e_pp),      lambda g: (g, 0)),      # edge mask paper-paper
            pl.BlockSpec((tb, e_ap),      lambda g: (g, 0)),      # edge mask author-paper
            pl.BlockSpec((e_pp, n_p),     lambda g: (0, 0)),      # M_pp     (resident)
            pl.BlockSpec((e_ap, n_a),     lambda g: (0, 0)),      # M_ap     (resident)
            pl.BlockSpec((1, n_p),        lambda g: (0, 0)),      # self one-hot (resident)
            pl.BlockSpec((k_cat, hid),    lambda g: (0, 0)),      # W_cat    (resident)
            pl.BlockSpec((1, hid),        lambda g: (0, 0)),      # b1       (resident)
            pl.BlockSpec((hid, pad_cls),  lambda g: (0, 0)),      # W_out (lane-padded)
            pl.BlockSpec((1, pad_cls),    lambda g: (0, 0)),      # b_out (lane-padded)
        ],
        out_specs=pl.BlockSpec((tb, pad_cls), lambda g: (g, 0)),
        out_shape=jax.ShapeDtypeStruct((b_pad, pad_cls), jnp.float32),
        compiler_params=pltpu.CompilerParams(
            dimension_semantics=("parallel",)),   # only matters for large B (>TB_MAX)
    )(x_p_p, x_a_p, em_pp_p, em_ap_p, m_pp, m_ap, self_oh,
      w_cat, b1, w_out_pad, b_out_pad)
    return out[:B, :N_CLS]                        # drop sample/lane padding -> (B, N_CLS)


# --------------------------- synthetic hetero GNN ---------------------------
class HeteroGNN:
    """1-layer hetero graph conv (sum aggregation, edge-mask-weighted messages)
    + linear head on the 'paper' node type.  Edge masks enter exactly as PyG's
    set_hetero_masks(apply_sigmoid=False): each message is scaled by its raw
    mask value.  Masks are passed FUNCTIONALLY (no set/clear_masks state)."""

    def __init__(self, key):
        k = jax.random.split(key, 6)
        s_in = 1.0 / jnp.sqrt(jnp.float32(F_IN))
        s_h = 1.0 / jnp.sqrt(jnp.float32(HID))
        self.w_pp = jax.random.normal(k[0], (F_IN, HID), jnp.float32) * s_in
        self.w_ap = jax.random.normal(k[1], (F_IN, HID), jnp.float32) * s_in
        self.w_self = jax.random.normal(k[2], (F_IN, HID), jnp.float32) * s_in
        self.b1 = jax.random.normal(k[3], (1, HID), jnp.float32) * 0.1
        self.w_out = jax.random.normal(k[4], (HID, N_CLS), jnp.float32) * s_h
        self.b_out = jax.random.normal(k[5], (1, N_CLS), jnp.float32) * 0.1
        # Merged hidden weight (one K = 3*F_IN MXU pass in-kernel).
        self.w_cat = jnp.concatenate([self.w_pp, self.w_ap, self.w_self], axis=0)
        # Lane-dense head (done once at init): pad N_CLS=4 -> 128 lanes so the
        # kernel's output store is a full-width unmasked vst.
        self.w_out_pad = jnp.zeros((HID, PAD_CLS), jnp.float32).at[:, :N_CLS].set(self.w_out)
        self.b_out_pad = jnp.zeros((1, PAD_CLS), jnp.float32).at[:, :N_CLS].set(self.b_out)

    def __call__(self, x_dict, edge_index_dict, edge_mask_dict=None, output_idx=None):
        # TODO(synk): output_idx=None (full-graph logits) path not ported; the
        # Captum wrapper always supplies an int output_idx in this usage.
        assert output_idx is not None
        x_p = jnp.asarray(x_dict["paper"], jnp.float32)
        x_a = jnp.asarray(x_dict["author"], jnp.float32)
        if x_p.ndim == 2:                       # allow the original unbatched layout
            x_p, x_a = x_p[None], x_a[None]
        B = x_p.shape[0]
        ei_pp = jnp.asarray(edge_index_dict[EDGE_TYPES[0]], jnp.int32)
        ei_ap = jnp.asarray(edge_index_dict[EDGE_TYPES[1]], jnp.int32)
        if edge_mask_dict is None:              # unmasked == mask of ones
            em_pp = jnp.ones((B, ei_pp.shape[1]), jnp.float32)
            em_ap = jnp.ones((B, ei_ap.shape[1]), jnp.float32)
        else:
            em_pp = jnp.asarray(edge_mask_dict[EDGE_TYPES[0]], jnp.float32).reshape(B, -1)
            em_ap = jnp.asarray(edge_mask_dict[EDGE_TYPES[1]], jnp.float32).reshape(B, -1)
        out_idx = jnp.asarray(output_idx, jnp.int32)
        return _fused_forward(x_p, x_a, em_pp, em_ap, ei_pp, ei_ap,
                              self.w_cat, self.b1,
                              self.w_out_pad, self.b_out_pad, out_idx)


# --------------------------- CaptumHeteroModel port --------------------------
class CaptumHeteroModelPallas:
    """mask_type='node_and_edge' variant of CaptumHeteroModel.forward.

    Differences driven by the perf review (per-sample semantics unchanged):
      * dim 0 of every mask tensor is the Captum perturbation batch B >= 1 and
        all B samples run in ONE fused pallas_call (sample index on the M axis,
        chunked only when B > 256).  B=1 matches the original wrapper exactly
        ((1, N_CLS) output).
      * edge masks flow functionally into the model instead of via
        set_hetero_masks / clear_masks object mutation.
      * the output_idx row-select of postprocess() is fused into the kernel.
    """

    def __init__(self, model, mask_type, output_idx, metadata):
        assert mask_type == "node_and_edge"
        self.model = model
        self.mask_type = mask_type
        self.output_idx = output_idx
        self.node_types = metadata[0]
        self.edge_types = metadata[1]
        self.num_node_types = len(self.node_types)
        self.num_edge_types = len(self.edge_types)

    def _captum_data_to_hetero_data(self, *args):
        node_tensors = args[:self.num_node_types]            # keep batch dim (B, N, F)
        x_dict = dict(zip(self.node_types, node_tensors))
        edge_mask_tensors = args[self.num_node_types:
                                 self.num_node_types + self.num_edge_types]
        edge_mask_dict = dict(zip(self.edge_types, edge_mask_tensors))     # (B, E)
        edge_index_dict = args[self.num_node_types + self.num_edge_types]
        return x_dict, edge_index_dict, edge_mask_dict

    def forward(self, *args):
        assert len(args) >= self.num_node_types + self.num_edge_types + 1
        x_dict, edge_index_dict, edge_mask_dict = \
            self._captum_data_to_hetero_data(*args)
        x = self.model(x_dict, edge_index_dict, edge_mask_dict, self.output_idx)
        return self.postprocess(x)

    def postprocess(self, x):
        # Row-select + unsqueeze(0) are already fused into the kernel; x is
        # (B, N_CLS), one row per mask sample.
        # TODO(synk): binary_classification/probs postprocess branch not
        # exercised (model_config=None), as in the common multiclass usage.
        return x


# ------------------------------ references -----------------------------------
def _selected_ref(xp, x_p, x_a, em_pp, em_ap, src_pp, dst_pp, src_ap, dst_ap,
                  w_pp, w_ap, w_self, b1, w_out, b_out, idx):
    """Row-selected formulation mirroring the kernel's math (np or jnp)."""
    n_p, n_a = x_p.shape[1], x_a.shape[1]
    dt = x_p.dtype
    s_pp = (src_pp[:, None] == xp.arange(n_p)[None, :]).astype(dt)
    s_ap = (src_ap[:, None] == xp.arange(n_a)[None, :]).astype(dt)
    onehot = (xp.arange(n_p) == idx).astype(dt).reshape(1, n_p)
    outs = []
    for b in range(x_p.shape[0]):
        sel_pp = (em_pp[b] * (dst_pp == idx).astype(dt)).reshape(1, -1)
        sel_ap = (em_ap[b] * (dst_ap == idx).astype(dt)).reshape(1, -1)
        xp_agg = (sel_pp @ s_pp) @ x_p[b]
        xa_agg = (sel_ap @ s_ap) @ x_a[b]
        x_self = onehot @ x_p[b]
        h = xp.maximum(xp_agg @ w_pp + xa_agg @ w_ap + x_self @ w_self + b1, 0.0)
        outs.append(h @ w_out + b_out)
    return xp.concatenate(outs, axis=0)                       # (B, N_CLS)


def _full_graph_ref_np(x_p, x_a, em_pp, em_ap, ei_pp, ei_ap,
                       w_pp, w_ap, w_self, b1, w_out, b_out, idx):
    """Original module semantics in float64 NumPy: scatter-built masked dense
    adjacency, full hetero conv + head, then postprocess row-select."""
    n_p, n_a = x_p.shape[1], x_a.shape[1]
    outs = []
    for b in range(x_p.shape[0]):
        a_pp = np.zeros((n_p, n_p))
        np.add.at(a_pp, (ei_pp[1], ei_pp[0]), em_pp[b])
        a_ap = np.zeros((n_p, n_a))
        np.add.at(a_ap, (ei_ap[1], ei_ap[0]), em_ap[b])
        h = np.maximum(a_pp @ x_p[b] @ w_pp + a_ap @ x_a[b] @ w_ap
                       + x_p[b] @ w_self + b1, 0.0)
        logits = h @ w_out + b_out
        outs.append(logits[idx][None, :])
    return np.concatenate(outs, axis=0)


# ----------------------------------- main ------------------------------------
if __name__ == "__main__":
    key = jax.random.PRNGKey(0)
    k_model, k_xp, k_xa, k_mp, k_ma, k_ep, k_ea = jax.random.split(key, 7)

    model = HeteroGNN(k_model)
    captum_model = CaptumHeteroModelPallas(
        model, "node_and_edge", OUTPUT_IDX, (list(NODE_TYPES), list(EDGE_TYPES)))

    # Captum-formatted inputs.  dim 0 is the perturbation-sample batch
    # (B=1 in the raw wrapper; B=8 here to exercise the batched sample axis).
    B = 8
    x_paper_mask = jax.random.normal(k_xp, (B, N_PAPER, F_IN), jnp.float32)
    x_author_mask = jax.random.normal(k_xa, (B, N_AUTHOR, F_IN), jnp.float32)
    edge_mask_pp = jax.random.uniform(k_mp, (B, E_PP), jnp.float32)
    edge_mask_ap = jax.random.uniform(k_ma, (B, E_AP), jnp.float32)

    src_pp = jax.random.randint(k_ep, (E_PP,), 0, N_PAPER, jnp.int32)
    dst_pp = jax.random.randint(jax.random.fold_in(k_ep, 1), (E_PP,), 0, N_PAPER, jnp.int32)
    ei_pp = jnp.stack([src_pp, dst_pp])                       # [2, E_PP]
    src_ap = jax.random.randint(k_ea, (E_AP,), 0, N_AUTHOR, jnp.int32)
    dst_ap = jax.random.randint(jax.random.fold_in(k_ea, 1), (E_AP,), 0, N_PAPER, jnp.int32)
    ei_ap = jnp.stack([src_ap, dst_ap])                       # [2, E_AP]
    edge_index_dict = {EDGE_TYPES[0]: ei_pp, EDGE_TYPES[1]: ei_ap}

    out = captum_model.forward(x_paper_mask, x_author_mask,
                               edge_mask_pp, edge_mask_ap, edge_index_dict)
    out = jax.block_until_ready(out)
    assert out.shape == (B, N_CLS), out.shape

    # --- correctness checks ---------------------------------------------------
    np64 = lambda a: np.asarray(a, np.float64)
    ei_pp_np, ei_ap_np = np.asarray(ei_pp), np.asarray(ei_ap)
    w64 = [np64(a) for a in (model.w_pp, model.w_ap, model.w_self,
                             model.b1, model.w_out, model.b_out)]

    # (a) exact (float64, host): fused row-selected formulation == original
    #     scatter-built full-graph formulation of CaptumHeteroModel.
    ref_full = _full_graph_ref_np(np64(x_paper_mask), np64(x_author_mask),
                                  np64(edge_mask_pp), np64(edge_mask_ap),
                                  ei_pp_np, ei_ap_np, *w64, OUTPUT_IDX)
    ref_sel64 = _selected_ref(np, np64(x_paper_mask), np64(x_author_mask),
                              np64(edge_mask_pp), np64(edge_mask_ap),
                              ei_pp_np[0], ei_pp_np[1], ei_ap_np[0], ei_ap_np[1],
                              *w64, OUTPUT_IDX)
    assert np.allclose(ref_sel64, ref_full, atol=1e-9, rtol=1e-9)

    # (b) tight: Pallas kernel vs the same math evaluated by XLA in float32.
    twin = _selected_ref(jnp, x_paper_mask, x_author_mask, edge_mask_pp, edge_mask_ap,
                         ei_pp[0], ei_pp[1], ei_ap[0], ei_ap[1],
                         model.w_pp, model.w_ap, model.w_self, model.b1,
                         model.w_out, model.b_out, OUTPUT_IDX)
    assert jnp.allclose(out, twin, atol=1e-4, rtol=1e-4), (out, twin)

    # (c) end-to-end vs the exact float64 reference (all-f32 math => tight).
    assert np.allclose(np.asarray(out, np.float64), ref_full, atol=1e-3, rtol=1e-3)

    # (d) B=1 path reproduces the original CaptumHeteroModel output shape/values.
    out1 = captum_model.forward(x_paper_mask[:1], x_author_mask[:1],
                                edge_mask_pp[:1], edge_mask_ap[:1], edge_index_dict)
    out1 = jax.block_until_ready(out1)
    assert out1.shape == (1, N_CLS), out1.shape
    assert jnp.allclose(out1, out[:1], atol=1e-5, rtol=1e-5)

    print("KERNEL_OK")
</pallas_src>

<mosaic_0001>
module attributes {stable_mosaic.version = 11 : i64} {
  func.func @_captum_hetero_kernel(%arg0: i32, %arg1: memref<8x16x32xf32, #tpu.memory_space<vmem>>, %arg2: memref<8x12x32xf32, #tpu.memory_space<vmem>>, %arg3: memref<8x40xf32, #tpu.memory_space<vmem>>, %arg4: memref<8x30xf32, #tpu.memory_space<vmem>>, %arg5: memref<40x16xf32, #tpu.memory_space<vmem>>, %arg6: memref<30x12xf32, #tpu.memory_space<vmem>>, %arg7: memref<1x16xf32, #tpu.memory_space<vmem>>, %arg8: memref<96x32xf32, #tpu.memory_space<vmem>>, %arg9: memref<1x32xf32, #tpu.memory_space<vmem>>, %arg10: memref<32x128xf32, #tpu.memory_space<vmem>>, %arg11: memref<1x128xf32, #tpu.memory_space<vmem>>, %arg12: memref<8x128xf32, #tpu.memory_space<vmem>>) attributes {dimension_semantics = [#tpu.dimension_semantics<parallel>], iteration_bounds = array<i64: 1>, scalar_prefetch = 0 : i64, scratch_operands = 0 : i64, tpu.core_type = #tpu.core_type<tc>, window_params = [{transform_indices = @transform_0, window_bounds = array<i64: 8, 16, 32>}, {transform_indices = @transform_1, window_bounds = array<i64: 8, 12, 32>}, {transform_indices = @transform_2, window_bounds = array<i64: 8, 40>}, {transform_indices = @transform_3, window_bounds = array<i64: 8, 30>}, {pipeline_mode = #tpu.pipeline_mode<synchronous>, transform_indices = @transform_4, window_bounds = array<i64: 40, 16>}, {pipeline_mode = #tpu.pipeline_mode<synchronous>, transform_indices = @transform_5, window_bounds = array<i64: 30, 12>}, {pipeline_mode = #tpu.pipeline_mode<synchronous>, transform_indices = @transform_6, window_bounds = array<i64: 1, 16>}, {pipeline_mode = #tpu.pipeline_mode<synchronous>, transform_indices = @transform_7, window_bounds = array<i64: 96, 32>}, {pipeline_mode = #tpu.pipeline_mode<synchronous>, transform_indices = @transform_8, window_bounds = array<i64: 1, 32>}, {pipeline_mode = #tpu.pipeline_mode<synchronous>, transform_indices = @transform_9, window_bounds = array<i64: 32, 128>}, {pipeline_mode = #tpu.pipeline_mode<synchronous>, transform_indices = @transform_10, window_bounds = array<i64: 1, 128>}, {transform_indices = @transform_11, window_bounds = array<i64: 8, 128>}]} {
    %c0 = arith.constant 0 : index
    %c0_0 = arith.constant 0 : index
    %c0_1 = arith.constant 0 : index
    %0 = vector.load %arg1[%c0, %c0_0, %c0_1] : memref<8x16x32xf32, #tpu.memory_space<vmem>>, vector<8x16x32xf32>
    %c0_2 = arith.constant 0 : index
    %c0_3 = arith.constant 0 : index
    %c0_4 = arith.constant 0 : index
    %1 = vector.load %arg2[%c0_2, %c0_3, %c0_4] : memref<8x12x32xf32, #tpu.memory_space<vmem>>, vector<8x12x32xf32>
    %c0_5 = arith.constant 0 : index
    %c0_6 = arith.constant 0 : index
    %2 = vector.load %arg3[%c0_5, %c0_6] : memref<8x40xf32, #tpu.memory_space<vmem>>, vector<8x40xf32>
    %c0_7 = arith.constant 0 : index
    %c0_8 = arith.constant 0 : index
    %3 = vector.load %arg5[%c0_7, %c0_8] : memref<40x16xf32, #tpu.memory_space<vmem>>, vector<40x16xf32>
    %cst = arith.constant dense<0.000000e+00> : vector<8x16xf32>
    %4 = tpu.matmul %2, %3, %cst {dimension_numbers = #tpu.dot_dimension_numbers<[1], [0], [0], [1], [0, 0, 1, 1], [], []>} : vector<8x40xf32>, vector<40x16xf32>, vector<8x16xf32> -> vector<8x16xf32>
    %c0_9 = arith.constant 0 : index
    %c0_10 = arith.constant 0 : index
    %5 = vector.load %arg4[%c0_9, %c0_10] : memref<8x30xf32, #tpu.memory_space<vmem>>, vector<8x30xf32>
    %c0_11 = arith.constant 0 : index
    %c0_12 = arith.constant 0 : index
    %6 = vector.load %arg6[%c0_11, %c0_12] : memref<30x12xf32, #tpu.memory_space<vmem>>, vector<30x12xf32>
    %cst_13 = arith.constant dense<0.000000e+00> : vector<8x12xf32>
    %7 = tpu.matmul %5, %6, %cst_13 {dimension_numbers = #tpu.dot_dimension_numbers<[1], [0], [0], [1], [0, 0, 1, 1], [], []>} : vector<8x30xf32>, vector<30x12xf32>, vector<8x12xf32> -> vector<8x12xf32>
    %8 = vector.shape_cast %4 : vector<8x16xf32> to vector<8x16x1xf32>
    %9 = vector.broadcast %8 : vector<8x16x1xf32> to vector<8x16x32xf32>
    %10 = arith.mulf %9, %0 : vector<8x16x32xf32>
    %cst_14 = arith.constant dense<0.000000e+00> : vector<8x32xf32>
    %11 = vector.multi_reduction <add>, %10, %cst_14 [1] : vector<8x16x32xf32> to vector<8x32xf32>
    %12 = vector.shape_cast %7 : vector<8x12xf32> to vector<8x12x1xf32>
    %13 = vector.broadcast %12 : vector<8x12x1xf32> to vector<8x12x32xf32>
    %14 = arith.mulf %13, %1 : vector<8x12x32xf32>
    %cst_15 = arith.constant dense<0.000000e+00> : vector<8x32xf32>
    %15 = vector.multi_reduction <add>, %14, %cst_15 [1] : vector<8x12x32xf32> to vector<8x32xf32>
    %c0_16 = arith.constant 0 : index
    %c0_17 = arith.constant 0 : index
    %16 = vector.load %arg7[%c0_16, %c0_17] : memref<1x16xf32, #tpu.memory_space<vmem>>, vector<1x16xf32>
    %17 = vector.shape_cast %16 : vector<1x16xf32> to vector<1x16x1xf32>
    %18 = vector.broadcast %17 : vector<1x16x1xf32> to vector<8x16x32xf32>
    %19 = arith.mulf %18, %0 : vector<8x16x32xf32>
    %cst_18 = arith.constant dense<0.000000e+00> : vector<8x32xf32>
    %20 = vector.multi_reduction <add>, %19, %cst_18 [1] : vector<8x16x32xf32> to vector<8x32xf32>
    %21 = tpu.concatenate %11, %15, %20 in 1 : vector<8x32xf32>, vector<8x32xf32>, vector<8x32xf32> -> vector<8x96xf32>
    %c0_19 = arith.constant 0 : index
    %c0_20 = arith.constant 0 : index
    %22 = vector.load %arg8[%c0_19, %c0_20] : memref<96x32xf32, #tpu.memory_space<vmem>>, vector<96x32xf32>
    %cst_21 = arith.constant dense<0.000000e+00> : vector<8x32xf32>
    %23 = tpu.matmul %21, %22, %cst_21 {dimension_numbers = #tpu.dot_dimension_numbers<[1], [0], [0], [1], [0, 0, 1, 1], [], []>} : vector<8x96xf32>, vector<96x32xf32>, vector<8x32xf32> -> vector<8x32xf32>
    %c0_22 = arith.constant 0 : index
    %c0_23 = arith.constant 0 : index
    %24 = vector.load %arg9[%c0_22, %c0_23] : memref<1x32xf32, #tpu.memory_space<vmem>>, vector<1x32xf32>
    %25 = vector.broadcast %24 : vector<1x32xf32> to vector<8x32xf32>
    %26 = arith.addf %23, %25 : vector<8x32xf32>
    %cst_24 = arith.constant 0.000000e+00 : f32
    %27 = vector.broadcast %cst_24 : f32 to vector<8x32xf32>
    %28 = arith.maximumf %26, %27 : vector<8x32xf32>
    %c0_25 = arith.constant 0 : index
    %c0_26 = arith.constant 0 : index
    %29 = vector.load %arg10[%c0_25, %c0_26] : memref<32x128xf32, #tpu.memory_space<vmem>>, vector<32x128xf32>
    %cst_27 = arith.constant dense<0.000000e+00> : vector<8x128xf32>
    %30 = tpu.matmul %28, %29, %cst_27 {dimension_numbers = #tpu.dot_dimension_numbers<[1], [0], [0], [1], [0, 0, 1, 1], [], []>} : vector<8x32xf32>, vector<32x128xf32>, vector<8x128xf32> -> vector<8x128xf32>
    %c0_28 = arith.constant 0 : index
    %c0_29 = arith.constant 0 : index
    %31 = vector.load %arg11[%c0_28, %c0_29] : memref<1x128xf32, #tpu.memory_space<vmem>>, vector<1x128xf32>
    %32 = vector.broadcast %31 : vector<1x128xf32> to vector<8x128xf32>
    %33 = arith.addf %30, %32 : vector<8x128xf32>
    %c0_30 = arith.constant 0 : index
    %c0_31 = arith.constant 0 : index
    %34 = vector.load %arg12[%c0_30, %c0_31] : memref<8x128xf32, #tpu.memory_space<vmem>>, vector<8x128xf32>
    tpu.vector_store %arg12[%c0_30, %c0_31], %33 {strides = array<i32>} : memref<8x128xf32, #tpu.memory_space<vmem>>, vector<8x128xf32>,
    return
  }
  func.func @transform_0(%arg0: i32) -> (i32, i32, i32) {
    %c0_i32 = arith.constant 0 : i32
    %c0_i32_0 = arith.constant 0 : i32
    %c0_i32_1 = arith.constant 0 : i32
    return %arg0, %c0_i32, %c0_i32_0 : i32, i32, i32
  }
  func.func @transform_1(%arg0: i32) -> (i32, i32, i32) {
    %c0_i32 = arith.constant 0 : i32
    %c0_i32_0 = arith.constant 0 : i32
    %c0_i32_1 = arith.constant 0 : i32
    return %arg0, %c0_i32, %c0_i32_0 : i32, i32, i32
  }
  func.func @transform_2(%arg0: i32) -> (i32, i32) {
    %c0_i32 = arith.constant 0 : i32
    %c0_i32_0 = arith.constant 0 : i32
    return %arg0, %c0_i32 : i32, i32
  }
  func.func @transform_3(%arg0: i32) -> (i32, i32) {
    %c0_i32 = arith.constant 0 : i32
    %c0_i32_0 = arith.constant 0 : i32
    return %arg0, %c0_i32 : i32, i32
  }
  func.func @transform_4(%arg0: i32) -> (i32, i32) {
    %c0_i32 = arith.constant 0 : i32
    %c0_i32_0 = arith.constant 0 : i32
    %c0_i32_1 = arith.constant 0 : i32
    return %c0_i32, %c0_i32_0 : i32, i32
  }
  func.func @transform_5(%arg0: i32) -> (i32, i32) {
    %c0_i32 = arith.constant 0 : i32
    %c0_i32_0 = arith.constant 0 : i32
    %c0_i32_1 = arith.constant 0 : i32
    return %c0_i32, %c0_i32_0 : i32, i32
  }
  func.func @transform_6(%arg0: i32) -> (i32, i32) {
    %c0_i32 = arith.constant 0 : i32
    %c0_i32_0 = arith.constant 0 : i32
    %c0_i32_1 = arith.constant 0 : i32
    return %c0_i32, %c0_i32_0 : i32, i32
  }
  func.func @transform_7(%arg0: i32) -> (i32, i32) {
    %c0_i32 = arith.constant 0 : i32
    %c0_i32_0 = arith.constant 0 : i32
    %c0_i32_1 = arith.constant 0 : i32
    return %c0_i32, %c0_i32_0 : i32, i32
  }
  func.func @transform_8(%arg0: i32) -> (i32, i32) {
    %c0_i32 = arith.constant 0 : i32
    %c0_i32_0 = arith.constant 0 : i32
    %c0_i32_1 = arith.constant 0 : i32
    return %c0_i32, %c0_i32_0 : i32, i32
  }
  func.func @transform_9(%arg0: i32) -> (i32, i32) {
    %c0_i32 = arith.constant 0 : i32
    %c0_i32_0 = arith.constant 0 : i32
    %c0_i32_1 = arith.constant 0 : i32
    return %c0_i32, %c0_i32_0 : i32, i32
  }
  func.func @transform_10(%arg0: i32) -> (i32, i32) {
    %c0_i32 = arith.constant 0 : i32
    %c0_i32_0 = arith.constant 0 : i32
    %c0_i32_1 = arith.constant 0 : i32
    return %c0_i32, %c0_i32_0 : i32, i32
  }
  func.func @transform_11(%arg0: i32) -> (i32, i32) {
    %c0_i32 = arith.constant 0 : i32
    %c0_i32_0 = arith.constant 0 : i32
    return %arg0, %c0_i32 : i32, i32
  }
}

</mosaic_0001>

<bundles_post_ra>
// kernel: _fused_forward.1
= control target key start
LH: loop header
LB: loop body
LE: loop exit
PB: predicated region body
PF: predicated region fallthrough
CT: control target
= control target key end

     0   :  { %vm109_vm0 = vcmask 1045504   ;;  %v134_v0 = vlaneseq  ;;  %vm105_vm1 = vcmask 244736   ;;  %vm76_vm2 = vcmask 326656   ;;  %s792_s18 = smov 64   ;;  %s1246_s5 = inlined_call_operand.vmem [shape: f32[30,12], index: 5, kind: input, shape index: {}]   ;;  %s1247_s4 = inlined_call_operand.vmem [shape: f32[40,16], index: 4, kind: input, shape index: {}]   ;;  %s1248_s3 = inlined_call_operand.vmem [shape: f32[8,30], index: 3, kind: input, shape index: {}]   ;;  %s1249_s6 = inlined_call_operand.vmem [shape: f32[1,16], index: 6, kind: input, shape index: {}]   ;;  %s1250_s2 = inlined_call_operand.vmem [shape: f32[8,40], index: 2, kind: input, shape index: {}]   ;;  %s1251_s0 = inlined_call_operand.vmem [shape: f32[8,16,32], index: 0, kind: input, shape index: {}]   ;;  %s1252_s1 = inlined_call_operand.vmem [shape: f32[8,12,32], index: 1, kind: input, shape index: {}]   ;;  %s1253_s8 = inlined_call_operand.vmem [shape: f32[1,32], index: 8, kind: input, shape index: {}]   ;;  %s1254_s7 = inlined_call_operand.vmem [shape: f32[96,32], index: 7, kind: input, shape index: {}]   ;;  %s1255_s9 = inlined_call_operand.vmem [shape: f32[32,128], index: 9, kind: input, shape index: {}]   ;;  %s1256_s10 = inlined_call_operand.vmem [shape: f32[1,128], index: 10, kind: input, shape index: {}]   ;;  %s1257_s11 = inlined_call_operand.vmem [shape: f32[8,128], index: 11, kind: output, shape index: {}]  }
   0x1   :  { %v104_v1 = vld [vmem:[%s1246_s5 + $0x18] sm:$0x3f]  ;;  %v103_v2 = vld [vmem:[%s1246_s5 + $0x10] sm:$0xff]  ;;  %v75_v3 = vld [vmem:[%s1247_s4 + $0x20] sm:$0xff]  ;;  %vm253_vm3 = vcmask 261120   ;;  %vm629_vm4 = vcmask 1041409  }
   0x2   :  { %761 = vmatpush.msk.msra.mxu1 %vm109_vm0, %v104_v1  ;;  %v863_v4 = vshrl.u32 %v134_v0, 7  ;;  %v102_v5 = vld [vmem:[%s1246_s5 + $0x8] sm:$0xff]  ;;  %91 = vmatpush.msra.mxu0 %v75_v3  ;;  %v74_v6 = vld [vmem:[%s1247_s4 + $0x18] sm:$0xff]  ;;  %v73_v7 = vld [vmem:[%s1247_s4 + $0x10] sm:$0xff]  ;;  %vm631_vm5 = vcmask 1042434   ;;  %vm633_vm6 = vcmask 1043459  }
   0x3   :  { %v101_v9 = vld [vmem:[%s1246_s5] sm:$0xff]  ;;  %v72_v11 = vld [vmem:[%s1247_s4 + $0x8] sm:$0xff]  ;;  %v933_v32 = vld [vmem:[%s1251_s0 + $0x18] sm:$0xff]  ;;  %vm635_vm7 = vcmask 1044484   ;;  %vm637_vm8 = vcmask 1045509   ;;  %vm639_vm9 = vcmask 1046534  }
   0x4   :  { %126 = vmatpush.msra.mxu1 %v103_v2  ;;  %767 = vset.pattern.permute.xlu1 %v863_v4  ;;  %v876_v8 = vadd.s32 8, %v863_v4  ;;  %v100_v10 = vld [vmem:[%s1248_s3] sm:$0xff]  ;;  %v921_v29 = vld [vmem:[%s1251_s0 + $0x8] sm:$0xff]  ;;  %v938_v33 = vld [vmem:[%s1251_s0 + $0x10] sm:$0xff]  ;;  %vm641_vm10 = vcmask 1047559   ;;  %vm447_vm11 = vcmask 257024  }
   0x5   :  { %92 = vmatpush.msra.mxu0 %v74_v6  ;;  %769 = vset.pattern.permute.xlu0 %v863_v4  ;;  %v71_v12 = vld [vmem:[%s1247_s4] sm:$0xff]  ;;  %v944_v34 = vld [vmem:[%s1251_s0 + $0x28] sm:$0xff]  ;;  %v963_v40 = vld [vmem:[%s1251_s0 + $0x38] sm:$0xff]  ;;  %vm681_vm12 = vcmask 523264   ;;  %vm699_vm13 = vcmask 785408  }
   0x6   :  { %127 = vmatpush.msra.mxu1 %v102_v5  ;;  %768 = vset.pattern.permute.xlu2 %v876_v8  ;;  %v789_v13 = vld [vmem:[%s1249_s6] ss:$0 sm:$0xff]  ;;  %v972_v44 = vld [vmem:[%s1251_s0 + $0x30] sm:$0xff]  ;;  %v985_v51 = vld [vmem:[%s1251_s0 + $0x48] sm:$0xff] }
   0x7   :  { %93 = vmatpush.msra.mxu0 %v73_v7  ;;  %v70_v14 = vld [vmem:[%s1250_s2] sm:$0xff]  ;;  %v1007_v61 = vld [vmem:[%s1251_s0 + $0x50] sm:$0xff]  ;;  %v1012_v62 = vld [vmem:[%s1251_s0 + $0x58] sm:$0xff] }
   0x8   :  { %128 = vmatpush.msra.mxu1 %v101_v9  ;;  %v928_v31 = vld [vmem:[%s1251_s0] sm:$0xff]  ;;  %v1024_v6 = vld [vmem:[%s1251_s0 + $0x68] sm:$0xff] }
   0x9   :  { %762 = vmatmul.msk.f32.vlgmr.msra.gmra.mxu1 %vm105_vm1, %v100_v10  ;;  %94 = vmatpush.msra.mxu0 %v72_v11  ;;  %v956_v38 = vld [vmem:[%s1251_s0 + $0x20] sm:$0xff] }
   0xa   :  { %v990_v52 = vld [vmem:[%s1251_s0 + $0x40] sm:$0xff] }
   0xb   :  { %95 = vmatpush.msra.mxu0 %v71_v12  ;;  %v1019_v5 = vld [vmem:[%s1251_s0 + $0x60] sm:$0xff] }
   0xc   :  { %760 = vmatmul.msk.f32.vlgmr.msra.gmra.mxu0 %vm76_vm2, %v70_v14  ;;  %525 = vperm.xlu1 %767, %v789_v13  }
   0xe   :  { %531 = vperm.xlu2 %768, %v789_v13   ;;  %v1035_v13 = vld [vmem:[%s1251_s0 + $0x70] sm:$0xff] }
  0x16   :  { %772 = vset.pattern.permute.xlu2 %v863_v4 }
  0x68   :  { %v916_v28 = vpop.permute.xlu2 %531 }
  0x69   :  { %v534_v35 = vmul.f32 %v916_v28, %v921_v29  ;;  %v536_v37 = vmul.f32 %v916_v28, %v933_v32  ;;  %v538_v41 = vmul.f32 %v916_v28, %v944_v34  ;;  %v540_v50 = vmul.f32 %v916_v28, %v963_v40 }
  0x6a   :  { %v542_v58 = vmul.f32 %v916_v28, %v985_v51  ;;  %v544_v9 = vmul.f32 %v916_v28, %v1012_v62 }
  0x6b   :  { %v550_v43 = vsel %vm253_vm3, %v534_v35, 0.0  ;;  %v559_v48 = vsel %vm253_vm3, %v536_v37, 0.0  ;;  %v568_v55 = vsel %vm253_vm3, %v538_v41, 0.0  ;;  %v577_v59 = vsel %vm253_vm3, %v540_v50, 0.0 }
  0x6c   :  { %v586_v12 = vsel %vm253_vm3, %v542_v58, 0.0 }
  0x7e   :  { %v923_v30 = vpop.permute.xlu1 %525 }
  0x7f   :  { %v533_v36 = vmul.f32 %v923_v30, %v928_v31  ;;  %v535_v39 = vmul.f32 %v923_v30, %v938_v33  ;;  %v537_v45 = vmul.f32 %v923_v30, %v956_v38  ;;  %v539_v53 = vmul.f32 %v923_v30, %v972_v44 }
  0x80   :  { %v541_v60 = vmul.f32 %v923_v30, %v990_v52  ;;  %v543_v7 = vmul.f32 %v923_v30, %v1007_v61  ;;  %v545_v14 = vmul.f32 %v923_v30, %v1019_v5 }
  0x81   :  { %v549_v46 = vsel %vm253_vm3, %v533_v36, 0.0  ;;  %v558_v49 = vsel %vm253_vm3, %v535_v39, 0.0  ;;  %v567_v57 = vsel %vm253_vm3, %v537_v45, 0.0  ;;  %v576_v1 = vsel %vm253_vm3, %v539_v53, 0.0 }
  0x82   :  { %v551_v54 = vadd.f32 %v550_v43, %v549_v46  ;;  %v560_v56 = vadd.f32 %v559_v48, %v558_v49  ;;  %v569_v0 = vadd.f32 %v568_v55, %v567_v57  ;;  %v578_v10 = vadd.f32 %v577_v59, %v576_v1 }
  0x83   :  { %v585_v11 = vsel %vm253_vm3, %v541_v60, 0.0  ;;  %v603_v36 = vsel %vm253_vm3, %v545_v14, 0.0 }
  0x84   :  { %v552_v63 = vrot.slane %v551_v54, 4  ;;  %v561_v3 = vrot.slane %v560_v56, 4 }
  0x86   :  { %v130_v15 = vpop.f32.mrf.mxu1 }
  0x87   :  { %v352_v16 = vperm.slane %v130_v15, 2  ;;  %v339_v17 = vperm.slane %v130_v15, 1  ;;  %v326_v18 = vperm.slane %v130_v15, 0  ;;  %v365_v19 = vperm.slane %v130_v15, 3 }
  0x88   :  { %v378_v20 = vperm.slane %v130_v15, 4  ;;  %v391_v21 = vperm.slane %v130_v15, 5  ;;  %v404_v22 = vperm.slane %v130_v15, 6  ;;  %v417_v23 = vperm.slane %v130_v15, 7 }
  0x89   :  { %357 = vperm.xlu2 %772, %v352_v16   ;;  %344 = vperm.xlu1 %767, %v339_v17   ;;  %v908_v24 = vpop.f32.mrf.mxu0  ;;  %v553_v15 = vadd.f32 %v552_v63, %v551_v54 }
  0x8a   :  { %331 = vperm.xlu0 %769, %v326_v18   ;;  %v133_v25 = vperm.slane %v908_v24, 0  ;;  %v146_v26 = vperm.slane %v908_v24, 1  ;;  %v159_v27 = vperm.slane %v908_v24, 2  ;;  %v172_v42 = vperm.slane %v908_v24, 3 }
  0x8b   :  { %v198_v47 = vperm.slane %v908_v24, 5  ;;  %v185_v2 = vperm.slane %v908_v24, 4  ;;  %v224_v37 = vperm.slane %v908_v24, 7 }
  0x91   :  { %773 = vset.pattern.permute.xlu2 %v876_v8  ;;  %771 = vset.pattern.permute.xlu1 %v876_v8 }
  0x92   :  { %770 = vset.pattern.permute.xlu0 %v876_v8 }
  0x99   :  { %363 = vperm.xlu2 %773, %v352_v16   ;;  %350 = vperm.xlu1 %771, %v339_v17   ;;  %v570_v16 = vrot.slane %v569_v0, 4  ;;  %v1043_v17 = vld [vmem:[%s1251_s0 + $0x78] sm:$0xff] }
  0x9a   :  { %337 = vperm.xlu0 %770, %v326_v18   ;;  %v546_v18 = vmul.f32 %v916_v28, %v1024_v6 }
  0x9b   :  { %v571_v35 = vadd.f32 %v570_v16, %v569_v0 }
  0xa1   :  { %775 = vset.pattern.permute.xlu2 %v863_v4  ;;  %376 = vperm.xlu1 %771, %v365_v19  }
  0xa2   :  { %774 = vset.pattern.permute.xlu0 %v863_v4 }
  0xa9   :  { %383 = vperm.xlu2 %775, %v378_v20   ;;  %389 = vperm.xlu1 %771, %v378_v20   ;;  %v587_v20 = vadd.f32 %v586_v12, %v585_v11 }
  0xaa   :  { %370 = vperm.xlu0 %774, %v365_v19   ;;  %v562_v19 = vadd.f32 %v561_v3, %v560_v56 }
  0xab   :  { %v588_v43 = vrot.slane %v587_v20, 4 }
  0xac   :  { %v563_v39 = vrot.slane %v562_v19, 2 }
  0xad   :  { %v589_v54 = vadd.f32 %v588_v43, %v587_v20 }
  0xae   :  { %v564_v50 = vadd.f32 %v563_v39, %v562_v19 }
  0xaf   :  { %v590_v63 = vrot.slane %v589_v54, 2 }
  0xb0   :  { %v565_v60 = vrot.slane %v564_v50, 1 }
  0xb1   :  { %396 = vperm.xlu2 %775, %v391_v21   ;;  %777 = vset.pattern.permute.xlu1 %v863_v4  ;;  %v591_v14 = vadd.f32 %v590_v63, %v589_v54 }
  0xb2   :  { %776 = vset.pattern.permute.xlu0 %v876_v8 }
  0xb9   :  { %778 = vset.pattern.permute.xlu2 %v876_v8  ;;  %409 = vperm.xlu1 %777, %v404_v22  }
  0xba   :  { %402 = vperm.xlu0 %776, %v391_v21   ;;  %v594_v21 = vsel %vm253_vm3, %v543_v7, 0.0 }
  0xc1   :  { %415 = vperm.xlu2 %778, %v404_v22   ;;  %422 = vperm.xlu1 %777, %v417_v23   ;;  %v595_v22 = vsel %vm253_vm3, %v544_v9, 0.0 }
  0xc2   :  { %779 = vset.pattern.permute.xlu0 %v863_v4  ;;  %v596_v41 = vadd.f32 %v595_v22, %v594_v21  ;;  %v592_v21 = vrot.slane %v591_v14, 1 }
  0xc4   :  { %v597_v53 = vrot.slane %v596_v41, 4 }
  0xc9   :  { %428 = vperm.xlu2 %778, %v417_v23   ;;  %780 = vset.pattern.permute.xlu1 %v876_v8  ;;  %v547_v23 = vmul.f32 %v923_v30, %v1035_v13  ;;  %v572_v30 = vrot.slane %v571_v35, 2 }
  0xca   :  { %138 = vperm.xlu0 %779, %v133_v25  }
  0xcb   :  { %v612_v48 = vsel %vm253_vm3, %v547_v23, 0.0  ;;  %v573_v57 = vadd.f32 %v572_v30, %v571_v35 }
  0xd1   :  { %781 = vset.pattern.permute.xlu2 %v863_v4  ;;  %144 = vperm.xlu1 %780, %v133_v25   ;;  %v579_v25 = vrot.slane %v578_v10, 4 }
  0xd2   :  { %782 = vset.pattern.permute.xlu0 %v876_v8 }
  0xd3   :  { %v580_v45 = vadd.f32 %v579_v25, %v578_v10  ;;  %v566_v10 = vadd.f32 %v565_v60, %v564_v50 }
  0xd5   :  { %v581_v55 = vrot.slane %v580_v45, 2 }
  0xd7   :  { %v582_v0 = vadd.f32 %v581_v55, %v580_v45  ;;  %v55_v55 = vld [vmem:[%s1252_s1 + $0x8] sm:$0xf] }
  0xd9   :  { %151 = vperm.xlu2 %781, %v146_v26   ;;  %157 = vperm.xlu1 %780, %v146_v26   ;;  %v548_v26 = vmul.f32 %v916_v28, %v1043_v17 }
  0xda   :  { %170 = vperm.xlu0 %782, %v159_v27  }
  0xdb   :  { %v613_v28 = vsel %vm253_vm3, %v548_v26, 0.0 }
  0xdc   :  { %v614_v56 = vadd.f32 %v613_v28, %v612_v48 }
  0xde   :  { %v615_v1 = vrot.slane %v614_v56, 4 }
  0xe0   :  { %v616_v16 = vadd.f32 %v615_v1, %v614_v56 }
  0xe1   :  { %164 = vperm.xlu2 %781, %v159_v27   ;;  %783 = vset.pattern.permute.xlu1 %v863_v4  ;;  %v554_v27 = vrot.slane %v553_v15, 2 }
  0xe2   :  { %785 = vset.pattern.permute.xlu0 %v863_v4  ;;  %v617_v23 = vrot.slane %v616_v16, 2 }
  0xe3   :  { %v555_v49 = vadd.f32 %v554_v27, %v553_v15  ;;  %v1064_v7 = vpop.permute.xlu2 %357  ;;  %v583_v15 = vrot.slane %v582_v0, 1 }
  0xe5   :  { %v556_v59 = vrot.slane %v555_v49, 1  ;;  %v584_v22 = vadd.f32 %v583_v15, %v582_v0 }
  0xe7   :  { %v557_v9 = vadd.f32 %v556_v59, %v555_v49 }
  0xe9   :  { %784 = vset.pattern.permute.xlu2 %v876_v8  ;;  %177 = vperm.xlu1 %783, %v172_v42  }
  0xea   :  { %203 = vperm.xlu0 %785, %v198_v47  }
  0xf1   :  { %183 = vperm.xlu2 %784, %v172_v42   ;;  %190 = vperm.xlu1 %783, %v185_v2   ;;  %v604_v42 = vsel %vm253_vm3, %v546_v18, 0.0 }
  0xf2   :  { %788 = vset.pattern.permute.xlu0 %v876_v8  ;;  %v605_v46 = vadd.f32 %v604_v42, %v603_v36  ;;  %v618_v42 = vadd.f32 %v617_v23, %v616_v16 }
  0xf3   :  { %v364_v27 = vpop.permute.xlu2 %363 }
  0xf4   :  { %v606_v58 = vrot.slane %v605_v46, 4  ;;  %v619_v48 = vrot.slane %v618_v42, 1 }
  0xf6   :  { %v607_v3 = vadd.f32 %v606_v58, %v605_v46 }
  0xf8   :  { %v608_v19 = vrot.slane %v607_v3, 2 }
  0xf9   :  { %196 = vperm.xlu2 %784, %v185_v2   ;;  %786 = vset.pattern.permute.xlu1 %v876_v8  ;;  %v598_v8 = vadd.f32 %v597_v53, %v596_v41  ;;  %v574_v2 = vrot.slane %v573_v57, 1  ;;  %v593_v41 = vadd.f32 %v592_v21, %v591_v14  ;;  %v57_v53 = vld [vmem:[%s1252_s1 + $0x18] sm:$0xf] }
  0xfa   :  { %235 = vperm.xlu0 %788, %v224_v37   ;;  %v609_v25 = vadd.f32 %v608_v19, %v607_v3  ;;  %v61_v3 = vld [vmem:[%s1252_s1 + $0x38] sm:$0xf] }
  0xfb   :  { %v599_v11 = vrot.slane %v598_v8, 2  ;;  %v345_v12 = vpop.permute.xlu1 %344  ;;  %v575_v18 = vadd.f32 %v574_v2, %v573_v57  ;;  %v620_v57 = vadd.f32 %v619_v48, %v618_v42  ;;  %v58_v2 = vld [vmem:[%s1252_s1 + $0x20] sm:$0xff] }
  0xfc   :  { %v332_v36 = vpop.permute.xlu0 %331  ;;  %v610_v45 = vrot.slane %v609_v25, 1  ;;  %v434_v16 = vmul.f32 %v1064_v7, %v58_v2 }
  0xfd   :  { %v600_v20 = vadd.f32 %v599_v11, %v598_v8  ;;  %v59_v8 = vld [vmem:[%s1252_s1 + $0x28] sm:$0xf] }
  0xfe   :  { %v611_v28 = vadd.f32 %v610_v45, %v609_v25  ;;  %v63_v11 = vld [vmem:[%s1252_s1 + $0x48] sm:$0xf]  ;;  %v435_v14 = vmul.f32 %v364_v27, %v59_v8 }
  0xff   :  { %v601_v35 = vrot.slane %v600_v20, 1 }
 0x100   :  { %v466_v27 = vsel %vm447_vm11, %v435_v14, 0.0 }
 0x101   :  { %787 = vset.pattern.permute.xlu2 %v863_v4  ;;  %209 = vperm.xlu1 %786, %v198_v47   ;;  %v670_v4 = vsel %vm629_vm4, %v566_v10, %v557_v9  ;;  %v211_v47 = vperm.slane %v908_v24, 6  ;;  %v602_v30 = vadd.f32 %v601_v35, %v600_v20  ;;  %v56_v24 = vld [vmem:[%s1252_s1 + $0x10] sm:$0xff]  ;;  %v62_v20 = vld [vmem:[%s1252_s1 + $0x40] sm:$0xff] }
 0x102   :  { %v671_v26 = vsel %vm631_vm5, %v575_v18, %v670_v4  ;;  %v432_v63 = vmul.f32 %v345_v12, %v56_v24  ;;  %v60_v12 = vld [vmem:[%s1252_s1 + $0x30] sm:$0xff] }
 0x103   :  { %v672_v43 = vsel %vm633_vm6, %v584_v22, %v671_v26  ;;  %v384_v49 = vpop.permute.xlu2 %383 }
 0x104   :  { %v673_v46 = vsel %vm635_vm7, %v593_v41, %v672_v43  ;;  %v456_v18 = vsel %vm253_vm3, %v432_v63, 0.0  ;;  %v438_v35 = vmul.f32 %v384_v49, %v62_v20  ;;  %v65_v63 = vld [vmem:[%s1252_s1 + $0x58] sm:$0xf] }
 0x105   :  { %v674_v50 = vsel %vm637_vm8, %v602_v30, %v673_v46 }
 0x106   :  { %v675_v58 = vsel %vm639_vm9, %v611_v28, %v674_v50  ;;  %v483_v46 = vsel %vm253_vm3, %v438_v35, 0.0 }
 0x107   :  { %v676_v1 = vsel %vm641_vm10, %v620_v57, %v675_v58 }
 0x109   :  { %216 = vperm.xlu2 %787, %v211_v47   ;;  %222 = vperm.xlu1 %786, %v211_v47  }
 0x10b   :  { %v351_v39 = vpop.permute.xlu1 %350  ;;  %v397_v21 = vpop.permute.xlu2 %396 }
 0x10c   :  { %v338_v54 = vpop.permute.xlu0 %337  ;;  %v433_v59 = vmul.f32 %v351_v39, %v57_v53 }
 0x10d   :  { %v431_v60 = vmul.f32 %v338_v54, %v55_v55  ;;  %v67_v55 = vld [vmem:[%s1252_s1 + $0x68] sm:$0xf] }
 0x10e   :  { %v457_v9 = vsel %vm447_vm11, %v433_v59, 0.0  ;;  %v66_v59 = vld [vmem:[%s1252_s1 + $0x60] sm:$0xff] }
 0x10f   :  { %v448_v10 = vsel %vm447_vm11, %v431_v60, 0.0  ;;  %v458_v22 = vadd.f32 %v457_v9, %v456_v18 }
 0x111   :  { %229 = vperm.xlu2 %787, %v224_v37   ;;  %v54_v37 = vld [vmem:[%s1252_s1] sm:$0xff]  ;;  %v459_v41 = vrot.slane %v458_v22, 4 }
 0x112   :  { %v430_v0 = vmul.f32 %v332_v36, %v54_v37  ;;  %v465_v36 = vsel %vm253_vm3, %v434_v16, 0.0 }
 0x113   :  { %v377_v56 = vpop.permute.xlu1 %376  ;;  %v467_v30 = vadd.f32 %v466_v27, %v465_v36  ;;  %v460_v28 = vadd.f32 %v459_v41, %v458_v22 }
 0x114   :  { %v446_v19 = vsel %vm253_vm3, %v430_v0, 0.0  ;;  %v437_v4 = vmul.f32 %v377_v56, %v61_v3  ;;  %v64_v56 = vld [vmem:[%s1252_s1 + $0x50] sm:$0xff] }
 0x115   :  { %v449_v23 = vadd.f32 %v448_v10, %v446_v19  ;;  %v468_v49 = vrot.slane %v467_v30, 4  ;;  %v461_v24 = vrot.slane %v460_v28, 2  ;;  %v440_v0 = vmul.f32 %v397_v21, %v64_v56 }
 0x116   :  { %v475_v39 = vsel %vm447_vm11, %v437_v4, 0.0  ;;  %v69_v4 = vld [vmem:[%s1252_s1 + $0x78] sm:$0xf] }
 0x117   :  { %v450_v42 = vrot.slane %v449_v23, 4  ;;  %v469_v60 = vadd.f32 %v468_v49, %v467_v30  ;;  %v462_v10 = vadd.f32 %v461_v24, %v460_v28  ;;  %v492_v19 = vsel %vm253_vm3, %v440_v0, 0.0 }
 0x119   :  { %677 = vrot.lane.b32.xlu2 %v676_v1, %s792_s18  ;;  %v451_v50 = vadd.f32 %v450_v42, %v449_v23 }
 0x11b   :  { %v390_v15 = vpop.permute.xlu1 %389  ;;  %v416_v53 = vpop.permute.xlu2 %415  ;;  %v452_v37 = vrot.slane %v451_v50, 2 }
 0x11c   :  { %v371_v47 = vpop.permute.xlu0 %370  ;;  %v439_v25 = vmul.f32 %v390_v15, %v63_v11  ;;  %v443_v8 = vmul.f32 %v416_v53, %v67_v55  ;;  %v470_v15 = vrot.slane %v469_v60, 2 }
 0x11d   :  { %v436_v26 = vmul.f32 %v371_v47, %v60_v12  ;;  %v453_v11 = vadd.f32 %v452_v37, %v451_v50 }
 0x11e   :  { %v484_v43 = vsel %vm447_vm11, %v439_v25, 0.0  ;;  %v502_v16 = vsel %vm447_vm11, %v443_v8, 0.0  ;;  %v463_v25 = vrot.slane %v462_v10, 1  ;;  %v471_v36 = vadd.f32 %v470_v15, %v469_v60 }
 0x11f   :  { %v474_v7 = vsel %vm253_vm3, %v436_v26, 0.0  ;;  %v485_v48 = vadd.f32 %v484_v43, %v483_v46  ;;  %v454_v26 = vrot.slane %v453_v11, 1 }
 0x120   :  { %v476_v45 = vadd.f32 %v475_v39, %v474_v7  ;;  %v68_v7 = vld [vmem:[%s1252_s1 + $0x70] sm:$0xff]  ;;  %s793_s1 = smov 32  }
 0x121   :  { %v486_v57 = vrot.slane %v485_v48, 4  ;;  %v455_v28 = vadd.f32 %v454_v26, %v453_v11  ;;  %v693_v26 = vld [vmem:[%s1254_s7 + $0x50] sm:$0xff] }
 0x122   :  { %v477_v54 = vrot.slane %v476_v45, 4 }
 0x123   :  { %v487_v2 = vadd.f32 %v486_v57, %v485_v48  ;;  %v429_v20 = vpop.permute.xlu2 %428  ;;  %v464_v48 = vadd.f32 %v463_v25, %v462_v10  ;;  %v694_v25 = vld [vmem:[%s1254_s7 + $0x58] sm:$0xff] }
 0x124   :  { %v478_v58 = vadd.f32 %v477_v54, %v476_v45  ;;  %v445_v39 = vmul.f32 %v429_v20, %v69_v4  ;;  %v472_v54 = vrot.slane %v471_v36, 1  ;;  %707 = vmatpush.msra.mxu2 %v694_v25 }
 0x125   :  { %v488_v22 = vrot.slane %v487_v2, 2 }
 0x126   :  { %v479_v12 = vrot.slane %v478_v58, 2  ;;  %v511_v49 = vsel %vm447_vm11, %v445_v39, 0.0  ;;  %708 = vmatpush.msra.mxu2 %v693_v26 }
 0x127   :  { %v489_v45 = vadd.f32 %v488_v22, %v487_v2 }
 0x128   :  { %v480_v27 = vadd.f32 %v479_v12, %v478_v58 }
 0x129   :  { %v490_v24 = vrot.slane %v489_v45, 1 }
 0x12a   :  { %v481_v50 = vrot.slane %v480_v27, 1 }
 0x12b   :  { %v410_v1 = vpop.permute.xlu1 %409  ;;  %v491_v2 = vadd.f32 %v490_v24, %v489_v45 }
 0x12c   :  { %v442_v3 = vmul.f32 %v410_v1, %v66_v59  ;;  %v403_v9 = vpop.permute.xlu0 %402  ;;  %v652_v59 = vsel %vm629_vm4, %v464_v48, %v455_v28  ;;  %v482_v60 = vadd.f32 %v481_v50, %v480_v27  ;;  %v692_v27 = vld [vmem:[%s1254_s7 + $0x48] sm:$0xff]  ;;  %v685_v48 = vld [vmem:[%s1254_s7 + $0x10] sm:$0xff] }
 0x12d   :  { %v441_v14 = vmul.f32 %v403_v9, %v65_v63  ;;  %v473_v63 = vadd.f32 %v472_v54, %v471_v36  ;;  %709 = vmatpush.msra.mxu2 %v692_v27  ;;  %v690_v36 = vld [vmem:[%s1254_s7 + $0x38] sm:$0xff]  ;;  %v684_v50 = vld [vmem:[%s1254_s7 + $0x8] sm:$0xff]  ;;  %v683_v27 = vld [vmem:[%s1254_s7] sm:$0xff] }
 0x12e   :  { %v501_v18 = vsel %vm253_vm3, %v442_v3, 0.0 }
 0x12f   :  { %v503_v47 = vadd.f32 %v502_v16, %v501_v18  ;;  %v493_v21 = vsel %vm447_vm11, %v441_v14, 0.0  ;;  %v653_v9 = vsel %vm631_vm5, %v473_v63, %v652_v59 }
 0x130   :  { %v494_v23 = vadd.f32 %v493_v21, %v492_v19  ;;  %v654_v12 = vsel %vm633_vm6, %v482_v60, %v653_v9 }
 0x131   :  { %v504_v35 = vrot.slane %v503_v47, 4  ;;  %v655_v16 = vsel %vm635_vm7, %v491_v2, %v654_v12 }
 0x132   :  { %v495_v41 = vrot.slane %v494_v23, 4 }
 0x133   :  { %v505_v42 = vadd.f32 %v504_v35, %v503_v47  ;;  %v423_v43 = vpop.permute.xlu1 %422  ;;  %v152_v22 = vpop.permute.xlu2 %151 }
 0x134   :  { %v496_v30 = vadd.f32 %v495_v41, %v494_v23  ;;  %v444_v46 = vmul.f32 %v423_v43, %v68_v7  ;;  %v691_v7 = vld [vmem:[%s1254_s7 + $0x40] sm:$0xff]  ;;  %v689_v41 = vld [vmem:[%s1254_s7 + $0x30] sm:$0xff] }
 0x135   :  { %v506_v53 = vrot.slane %v505_v42, 2  ;;  %710 = vmatpush.msra.mxu2 %v691_v7  ;;  %v687_v43 = vld [vmem:[%s1254_s7 + $0x20] sm:$0xff] }
 0x136   :  { %v497_v55 = vrot.slane %v496_v30, 2  ;;  %v510_v56 = vsel %vm253_vm3, %v444_v46, 0.0  ;;  %v686_v46 = vld [vmem:[%s1254_s7 + $0x18] sm:$0xff] }
 0x137   :  { %v512_v57 = vadd.f32 %v511_v49, %v510_v56  ;;  %v507_v37 = vadd.f32 %v506_v53, %v505_v42  ;;  %711 = vmatpush.msra.mxu2 %v690_v36  ;;  %v688_v42 = vld [vmem:[%s1254_s7 + $0x28] sm:$0xff] }
 0x138   :  { %v498_v58 = vadd.f32 %v497_v55, %v496_v30 }
 0x139   :  { %v513_v8 = vrot.slane %v512_v57, 4  ;;  %v508_v3 = vrot.slane %v507_v37, 1  ;;  %712 = vmatpush.msra.mxu2 %v689_v41 }
 0x13a   :  { %v499_v0 = vrot.slane %v498_v58, 1 }
 0x13b   :  { %v514_v1 = vadd.f32 %v513_v8, %v512_v57  ;;  %v509_v15 = vadd.f32 %v508_v3, %v507_v37  ;;  %v165_v35 = vpop.permute.xlu2 %164  ;;  %713 = vmatpush.msra.mxu2 %v688_v42  ;;  %v239_v37 = vmul.f32 %v152_v22, %v938_v33 }
 0x13c   :  { %v500_v10 = vadd.f32 %v499_v0, %v498_v58  ;;  %v139_v45 = vpop.permute.xlu0 %138  ;;  %v241_v59 = vmul.f32 %v165_v35, %v956_v38 }
 0x13d   :  { %v515_v11 = vrot.slane %v514_v1, 2  ;;  %714 = vmatpush.msra.mxu2 %v687_v43  ;;  %v237_v56 = vmul.f32 %v139_v45, %v928_v31  ;;  %v263_v0 = vsel %vm253_vm3, %v239_v37, 0.0 }
 0x13e   :  { %v656_v19 = vsel %vm637_vm8, %v500_v10, %v655_v16  ;;  %v272_v33 = vsel %vm253_vm3, %v241_v59, 0.0 }
 0x13f   :  { %v516_v14 = vadd.f32 %v515_v11, %v514_v1  ;;  %v657_v4 = vsel %vm639_vm9, %v509_v15, %v656_v19  ;;  %715 = vmatpush.msra.mxu2 %v686_v46  ;;  %v254_v8 = vsel %vm253_vm3, %v237_v56, 0.0 }
 0x141   :  { %v517_v18 = vrot.slane %v516_v14, 1  ;;  %716 = vmatpush.msra.mxu2 %v685_v48 }
 0x143   :  { %v518_v20 = vadd.f32 %v517_v18, %v516_v14  ;;  %v145_v21 = vpop.permute.xlu1 %144  ;;  %717 = vmatpush.msra.mxu2 %v684_v50 }
 0x144   :  { %v238_v55 = vmul.f32 %v145_v21, %v921_v29 }
 0x145   :  { %v658_v47 = vsel %vm641_vm10, %v518_v20, %v657_v4  ;;  %718 = vmatpush.msra.mxu2 %v683_v27  ;;  %v790_v27 = vld [vmem:[%s1253_s8] ss:$0 sm:$0xff] }
 0x146   :  { %659 = vrot.lane.b32.xlu1 %v658_v47, %s793_s1  ;;  %v255_v60 = vsel %vm253_vm3, %v238_v55, 0.0 }
 0x14b   :  { %v158_v23 = vpop.permute.xlu1 %157  ;;  %v184_v30 = vpop.permute.xlu2 %183 }
 0x14c   :  { %v171_v53 = vpop.permute.xlu0 %170  ;;  %v240_v58 = vmul.f32 %v158_v23, %v933_v32  ;;  %v256_v32 = vadd.f32 %v255_v60, %v254_v8  ;;  %v244_v38 = vmul.f32 %v184_v30, %v963_v40 }
 0x14d   :  { %v242_v63 = vmul.f32 %v171_v53, %v944_v34 }
 0x14e   :  { %v264_v29 = vsel %vm253_vm3, %v240_v58, 0.0  ;;  %v257_v40 = vrot.slane %v256_v32, 4 }
 0x14f   :  { %v265_v9 = vadd.f32 %v264_v29, %v263_v0  ;;  %v273_v10 = vsel %vm253_vm3, %v242_v63, 0.0 }
 0x150   :  { %v274_v18 = vadd.f32 %v273_v10, %v272_v33  ;;  %v258_v35 = vadd.f32 %v257_v40, %v256_v32 }
 0x151   :  { %v266_v20 = vrot.slane %v265_v9, 4 }
 0x152   :  { %v275_v25 = vrot.slane %v274_v18, 4  ;;  %v259_v30 = vrot.slane %v258_v35, 2 }
 0x153   :  { %v197_v54 = vpop.permute.xlu2 %196  ;;  %v267_v7 = vadd.f32 %v266_v20, %v265_v9 }
 0x154   :  { %v246_v34 = vmul.f32 %v197_v54, %v985_v51  ;;  %v276_v43 = vadd.f32 %v275_v25, %v274_v18  ;;  %v260_v55 = vadd.f32 %v259_v30, %v258_v35  ;;  %v725_v25 = vld [vmem:[%s1255_s9 + $0x8] sm:$0xff] }
 0x155   :  { %v268_v46 = vrot.slane %v267_v7, 2 }
 0x156   :  { %v291_v51 = vsel %vm253_vm3, %v246_v34, 0.0  ;;  %v277_v54 = vrot.slane %v276_v43, 2  ;;  %v261_v8 = vrot.slane %v260_v55, 1 }
 0x157   :  { %v269_v56 = vadd.f32 %v268_v46, %v267_v7 }
 0x158   :  { %v278_v59 = vadd.f32 %v277_v54, %v276_v43  ;;  %v262_v32 = vadd.f32 %v261_v8, %v260_v55 }
 0x159   :  { %v270_v63 = vrot.slane %v269_v56, 1 }
 0x15b   :  { %v178_v39 = vpop.permute.xlu1 %177 }
 0x15c   :  { %v204_v24 = vpop.permute.xlu0 %203  ;;  %v243_v31 = vmul.f32 %v178_v39, %v972_v44 }
 0x15d   :  { %v247_v44 = vmul.f32 %v204_v24, %v1007_v61 }
 0x15e   :  { %v281_v12 = vsel %vm253_vm3, %v243_v31, 0.0 }
 0x15f   :  { %v299_v61 = vsel %vm253_vm3, %v247_v44, 0.0 }
 0x163   :  { %v191_v28 = vpop.permute.xlu1 %190  ;;  %v217_v57 = vpop.permute.xlu2 %216 }
 0x164   :  { %v245_v2 = vmul.f32 %v191_v28, %v990_v52  ;;  %v249_v52 = vmul.f32 %v217_v57, %v1019_v5 }
 0x166   :  { %v290_v14 = vsel %vm253_vm3, %v245_v2, 0.0  ;;  %v308_v22 = vsel %vm253_vm3, %v249_v52, 0.0  ;;  %v279_v2 = vrot.slane %v278_v59, 1 }
 0x167   :  { %v292_v47 = vadd.f32 %v291_v51, %v290_v14 }
 0x169   :  { %v293_v39 = vrot.slane %v292_v47, 4 }
 0x16b   :  { %v230_v15 = vpop.permute.xlu2 %229  ;;  %v294_v50 = vadd.f32 %v293_v39, %v292_v47  ;;  %v791_v39 = vld [vmem:[%s1256_s10] ss:$0 sm:$0xff] }
 0x16c   :  { %v236_v16 = vpop.permute.xlu0 %235  ;;  %v251_v5 = vmul.f32 %v230_v15, %v1035_v13 }
 0x16d   :  { %v252_v21 = vmul.f32 %v236_v16, %v1043_v17  ;;  %v727_v17 = vld [vmem:[%s1255_s9 + $0x18] sm:$0xff]  ;;  %v295_v37 = vrot.slane %v294_v50, 2 }
 0x16e   :  { %v317_v41 = vsel %vm253_vm3, %v251_v5, 0.0  ;;  %747 = vmatpush.msra.mxu3 %v727_v17 }
 0x16f   :  { %v318_v13 = vsel %vm253_vm3, %v252_v21, 0.0  ;;  %v296_v31 = vadd.f32 %v295_v37, %v294_v50 }
 0x170   :  { %v319_v28 = vadd.f32 %v318_v13, %v317_v41 }
 0x171   :  { %v297_v10 = vrot.slane %v296_v31, 1 }
 0x172   :  { %v320_v24 = vrot.slane %v319_v28, 4 }
 0x173   :  { %v210_v49 = vpop.permute.xlu1 %209  ;;  %v298_v15 = vadd.f32 %v297_v10, %v296_v31  ;;  %v678_v5 = vpop.permute.xlu2 %677 }
 0x174   :  { %v248_v3 = vmul.f32 %v210_v49, %v1012_v62  ;;  %v282_v62 = vsel %vm253_vm3, %v244_v38, 0.0  ;;  %v321_v29 = vadd.f32 %v320_v24, %v319_v28  ;;  %v271_v38 = vadd.f32 %v270_v63, %v269_v56 }
 0x176   :  { %v300_v19 = vsel %vm253_vm3, %v248_v3, 0.0  ;;  %v322_v9 = vrot.slane %v321_v29, 2  ;;  %v630_v44 = vsel %vm629_vm4, %v271_v38, %v262_v32 }
 0x177   :  { %v301_v23 = vadd.f32 %v300_v19, %v299_v61 }
 0x178   :  { %v323_v14 = vadd.f32 %v322_v9, %v321_v29 }
 0x179   :  { %v302_v42 = vrot.slane %v301_v23, 4 }
 0x17a   :  { %v324_v18 = vrot.slane %v323_v14, 1 }
 0x17b   :  { %v223_v1 = vpop.permute.xlu1 %222  ;;  %v303_v53 = vadd.f32 %v302_v42, %v301_v23  ;;  %v726_v23 = vld [vmem:[%s1255_s9 + $0x10] sm:$0xff] }
 0x17c   :  { %v250_v11 = vmul.f32 %v223_v1, %v1024_v6  ;;  %v283_v6 = vadd.f32 %v282_v62, %v281_v12  ;;  %748 = vmatpush.msra.mxu3 %v726_v23 }
 0x17d   :  { %v304_v58 = vrot.slane %v303_v53, 2 }
 0x17e   :  { %v309_v4 = vsel %vm253_vm3, %v250_v11, 0.0  ;;  %v284_v36 = vrot.slane %v283_v6, 4  ;;  %v280_v11 = vadd.f32 %v279_v2, %v278_v59  ;;  %749 = vmatpush.msra.mxu3 %v725_v25 }
 0x17f   :  { %v310_v26 = vadd.f32 %v309_v4, %v308_v22  ;;  %v305_v1 = vadd.f32 %v304_v58, %v303_v53  ;;  %v325_v4 = vadd.f32 %v324_v18, %v323_v14 }
 0x180   :  { %v285_v48 = vadd.f32 %v284_v36, %v283_v6  ;;  %v632_v40 = vsel %vm631_vm5, %v280_v11, %v630_v44 }
 0x181   :  { %v311_v45 = vrot.slane %v310_v26, 4  ;;  %v306_v34 = vrot.slane %v305_v1, 1 }
 0x182   :  { %v286_v57 = vrot.slane %v285_v48, 2 }
 0x183   :  { %v312_v49 = vadd.f32 %v311_v45, %v310_v26  ;;  %v307_v16 = vadd.f32 %v306_v34, %v305_v1  ;;  %v724_v26 = vld [vmem:[%s1255_s9] sm:$0xff] }
 0x184   :  { %v287_v0 = vadd.f32 %v286_v57, %v285_v48  ;;  %750 = vmatpush.msra.mxu3 %v724_v26 }
 0x185   :  { %v313_v60 = vrot.slane %v312_v49, 2 }
 0x186   :  { %v288_v3 = vrot.slane %v287_v0, 1 }
 0x187   :  { %v314_v33 = vadd.f32 %v313_v60, %v312_v49 }
 0x188   :  { %v289_v52 = vadd.f32 %v288_v3, %v287_v0 }
 0x189   :  { %v315_v12 = vrot.slane %v314_v33, 1 }
 0x18a   :  { %v634_v19 = vsel %vm633_vm6, %v289_v52, %v632_v40 }
 0x18b   :  { %v316_v62 = vadd.f32 %v315_v12, %v314_v33  ;;  %v636_v20 = vsel %vm635_vm7, %v298_v15, %v634_v19 }
 0x18c   :  { %v638_v51 = vsel %vm637_vm8, %v307_v16, %v636_v20 }
 0x18d   :  { %v640_v6 = vsel %vm639_vm9, %v316_v62, %v638_v51 }
 0x18e   :  { %v642_v61 = vsel %vm641_vm10, %v325_v4, %v640_v6 }
 0x1b8   :  { %v660_v47 = vpop.permute.xlu1 %659 }
 0x1b9   :  { %v680_v21 = vsel %vm253_vm3, %v642_v61, %v660_v47 }
 0x1ba   :  { %v682_v22 = vsel %vm681_vm12, %v680_v21, %v678_v5 }
 0x1bb   :  { %763 = vmatmul.msk.f32.vlgmr.msra.gmra.mxu2 %vm699_vm13, %v682_v22 }
 0x23e   :  { %v720_v35 = vpop.f32.mrf.mxu2 }
 0x23f   :  { %v721_v7 = vadd.f32 %v790_v27, %v720_v35 }
 0x241   :  { %v723_v36 = vmax.f32 %v721_v7, 0.0 }
 0x243   :  { %764 = vmatmul.msk.f32.vlgmr.msra.gmra.mxu3 %vm253_vm3, %v723_v36 }
 0x2c6   :  { %v752_v41 = vpop.f32.mrf.mxu3 }
 0x2c7   :  { %v753_v13 = vadd.f32 %v791_v39, %v752_v41 }
 0x2c9   :  { %755 = vst [vmem:[%s1257_s11] sm:$0xff] %v753_v13 }

</bundles_post_ra>
